<compile_context>
chip_gen: v7x
topology: tpu7x:2x2x1
jax: 0.10.0
libtpu: 0.0.40
codegen_flags: <defaults>
</compile_context>

<pallas_src>
import jax
import jax.numpy as jnp
from jax import lax
from jax.experimental import pallas as pl
from jax.experimental.pallas import tpu as pltpu


def mlp_kernel(x_ref, w1_ref, b1_ref, w2_ref, b2_ref, alpha_ref, o_ref):
    x = x_ref[...]                                                   # [D_in, TN] bf16
    # linear_pre: bf16 x bf16 on the MXU, f32 accumulation, f32 bias add.
    h = jnp.dot(w1_ref[...], x, preferred_element_type=jnp.float32) + b1_ref[...]
    # PReLU (single learnable slope) in f32; slope is an SMEM scalar.
    a = alpha_ref[0]
    h = jnp.where(h >= 0.0, h, a * h)                                # [F, TN] f32
    # linear_out: cast activation back to bf16 for the MXU, accumulate in f32.
    y = jnp.dot(w2_ref[...], h.astype(w2_ref.dtype),
                preferred_element_type=jnp.float32) + b2_ref[...]    # [O, TN] f32
    # F.normalize(p=2, dim=-1, eps=1e-12) == y * rsqrt(max(sum(y^2), eps^2)).
    sumsq = jnp.sum(y * y, axis=0, keepdims=True)                    # [1, TN] sublane reduce
    inv_norm = lax.rsqrt(jnp.maximum(sumsq, 1e-24))                  # EUP rsqrt
    o_ref[...] = (y * inv_norm).astype(o_ref.dtype)                  # dense bf16 store


def _round_up(x, m):
    return ((x + m - 1) // m) * m


def mlp_forward(x, w_pre, b_pre, w_out, b_out, prelu_alpha, *, tn=8192):
    """x: [N, input_dim]; w_pre: [input_dim, feature_dim]; w_out: [feature_dim, output_dim].

    Weights are passed pre-transposed relative to nn.Linear; internally the kernel uses
    the nn.Linear-native [out, in] layout so it can run batch-in-lanes (W @ x).
    Returns [N, output_dim] in bf16.
    """
    N, input_dim = x.shape
    feature_dim = w_pre.shape[1]
    output_dim = w_out.shape[1]

    # Batch-in-lanes layout + bf16 storage (f32 accumulation inside the kernel).
    x_t = x.T.astype(jnp.bfloat16)                                   # [D_in, N]
    w1 = w_pre.T.astype(jnp.bfloat16)                                # [F, D_in]
    w2 = w_out.T.astype(jnp.bfloat16)                                # [O, F]
    b1 = b_pre.reshape(feature_dim, 1).astype(jnp.float32)
    b2 = b_out.reshape(output_dim, 1).astype(jnp.float32)
    alpha = prelu_alpha.reshape(1).astype(jnp.float32)               # SMEM scalar

    # Lane tile: multiple of 128, as large as requested, but keep >=2 grid steps when
    # N allows so both v7x TensorCores get work under dimension_semantics=("parallel",).
    n_min = _round_up(N, 128)
    tn_eff = min(_round_up(max(tn, 128), 128), n_min)
    if n_min >= 2 * 128:
        tn_eff = min(tn_eff, _round_up((n_min + 1) // 2, 128))
    n_pad = _round_up(N, tn_eff)
    if n_pad != N:
        x_t = jnp.pad(x_t, ((0, 0), (0, n_pad - N)))
    grid = (n_pad // tn_eff,)

    cost = pl.CostEstimate(
        flops=2 * N * (input_dim * feature_dim + feature_dim * output_dim),
        transcendentals=N,  # one rsqrt per batch element
        bytes_accessed=(N * input_dim * 2                      # x (bf16)
                        + N * output_dim * 2                   # out (bf16)
                        + (input_dim * feature_dim + feature_dim * output_dim) * 2
                        + (feature_dim + output_dim) * 4 + 4),
    )

    out_t = pl.pallas_call(
        mlp_kernel,
        out_shape=jax.ShapeDtypeStruct((output_dim, n_pad), jnp.bfloat16),
        grid=grid,
        in_specs=[
            pl.BlockSpec((input_dim, tn_eff), lambda i: (0, i)),        # x^T: streamed
            pl.BlockSpec((feature_dim, input_dim), lambda i: (0, 0)),   # W1: resident
            pl.BlockSpec((feature_dim, 1), lambda i: (0, 0)),           # b1: resident
            pl.BlockSpec((output_dim, feature_dim), lambda i: (0, 0)),  # W2: resident
            pl.BlockSpec((output_dim, 1), lambda i: (0, 0)),            # b2: resident
            pl.BlockSpec(memory_space=pltpu.MemorySpace.SMEM),          # PReLU slope
        ],
        out_specs=pl.BlockSpec((output_dim, tn_eff), lambda i: (0, i)),
        compiler_params=pltpu.CompilerParams(
            dimension_semantics=("parallel",),      # shard lane tiles across TCs (v7x)
            vmem_limit_bytes=32 * 1024 * 1024,      # portable headroom on v7x's 64 MiB
        ),
        cost_estimate=cost,
    )(x_t, w1, b1, w2, b2, alpha)

    out_t = out_t[:, :N] if n_pad != N else out_t
    return out_t.T                                                     # [N, output_dim]


def mlp_reference(x, w_pre, b_pre, w_out, b_out, prelu_alpha):
    """Pure-JAX f32 reference of the PyTorch forward (layer_num=2)."""
    h = x @ w_pre + b_pre.reshape(1, -1)
    a = prelu_alpha.reshape(())
    h = jnp.where(h >= 0.0, h, a * h)
    y = h @ w_out + b_out.reshape(1, -1)
    norm = jnp.sqrt(jnp.sum(y * y, axis=-1, keepdims=True))
    return y / jnp.maximum(norm, 1e-12)


if __name__ == "__main__":
    # Small shapes consistent with the module defaults (feature_pre=True, layer_num=2).
    # N deliberately not a multiple of 128 to exercise padding + a 2-step grid.
    N, input_dim, feature_dim, hidden_dim, output_dim = 300, 16, 32, 32, 16

    key = jax.random.PRNGKey(0)
    k_x, k_w1, k_b1, k_w2, k_b2 = jax.random.split(key, 5)

    x = jax.random.normal(k_x, (N, input_dim), dtype=jnp.float32)

    # Deterministic parameter init (uniform, like PyTorch's Linear default scale).
    bound1 = 1.0 / (input_dim ** 0.5)
    w_pre = jax.random.uniform(k_w1, (input_dim, feature_dim), jnp.float32, -bound1, bound1)
    b_pre = jax.random.uniform(k_b1, (feature_dim,), jnp.float32, -bound1, bound1)

    bound2 = 1.0 / (feature_dim ** 0.5)
    w_out = jax.random.uniform(k_w2, (feature_dim, output_dim), jnp.float32, -bound2, bound2)
    b_out = jax.random.uniform(k_b2, (output_dim,), jnp.float32, -bound2, bound2)

    prelu_alpha = jnp.array([0.25], dtype=jnp.float32)  # nn.PReLU() default init

    out = mlp_forward(x, w_pre, b_pre, w_out, b_out, prelu_alpha, tn=8192)
    jax.block_until_ready(out)
    assert out.shape == (N, output_dim)

    out_f32 = out.astype(jnp.float32)

    # Rows must be (approximately) unit L2 norm (bf16 output tolerance).
    norms = jnp.sqrt(jnp.sum(out_f32 * out_f32, axis=-1))
    assert bool(jnp.all(jnp.abs(norms - 1.0) < 1e-2))

    # Match the f32 reference to within bf16 input/weight/output tolerance.
    ref = mlp_reference(x, w_pre, b_pre, w_out, b_out, prelu_alpha)
    assert bool(jnp.max(jnp.abs(out_f32 - ref)) < 5e-2)

    print("KERNEL_OK")
</pallas_src>

<mosaic_0001>
module attributes {stable_mosaic.version = 11 : i64} {
  func.func @mlp_kernel(%arg0: i32, %arg1: memref<16x256xbf16, #tpu.memory_space<vmem>>, %arg2: memref<32x16xbf16, #tpu.memory_space<vmem>>, %arg3: memref<32x1xf32, #tpu.memory_space<vmem>>, %arg4: memref<16x32xbf16, #tpu.memory_space<vmem>>, %arg5: memref<16x1xf32, #tpu.memory_space<vmem>>, %arg6: memref<1xf32, #tpu.memory_space<smem>>, %arg7: memref<16x256xbf16, #tpu.memory_space<vmem>>) attributes {dimension_semantics = [#tpu.dimension_semantics<parallel>], iteration_bounds = array<i64: 2>, scalar_prefetch = 0 : i64, scratch_operands = 0 : i64, tpu.core_type = #tpu.core_type<tc>, window_params = [{transform_indices = @transform_0, window_bounds = array<i64: 16, 256>}, {pipeline_mode = #tpu.pipeline_mode<synchronous>, transform_indices = @transform_1, window_bounds = array<i64: 32, 16>}, {pipeline_mode = #tpu.pipeline_mode<synchronous>, transform_indices = @transform_2, window_bounds = array<i64: 32, 1>}, {pipeline_mode = #tpu.pipeline_mode<synchronous>, transform_indices = @transform_3, window_bounds = array<i64: 16, 32>}, {pipeline_mode = #tpu.pipeline_mode<synchronous>, transform_indices = @transform_4, window_bounds = array<i64: 16, 1>}, {transform_indices = @transform_5, window_bounds = array<i64: 1>}, {transform_indices = @transform_6, window_bounds = array<i64: 16, 256>}]} {
    %c0 = arith.constant 0 : index
    %c0_0 = arith.constant 0 : index
    %0 = vector.load %arg1[%c0, %c0_0] : memref<16x256xbf16, #tpu.memory_space<vmem>>, vector<16x256xbf16>
    %c0_1 = arith.constant 0 : index
    %c0_2 = arith.constant 0 : index
    %1 = vector.load %arg2[%c0_1, %c0_2] : memref<32x16xbf16, #tpu.memory_space<vmem>>, vector<32x16xbf16>
    %cst = arith.constant dense<0.000000e+00> : vector<32x256xf32>
    %2 = tpu.matmul %1, %0, %cst {dimension_numbers = #tpu.dot_dimension_numbers<[1], [0], [0], [1], [0, 0, 1, 1], [], []>} : vector<32x16xbf16>, vector<16x256xbf16>, vector<32x256xf32> -> vector<32x256xf32>
    %c0_3 = arith.constant 0 : index
    %c0_4 = arith.constant 0 : index
    %3 = vector.load %arg3[%c0_3, %c0_4] : memref<32x1xf32, #tpu.memory_space<vmem>>, vector<32x1xf32>
    %4 = vector.broadcast %3 : vector<32x1xf32> to vector<32x256xf32>
    %5 = arith.addf %2, %4 : vector<32x256xf32>
    %c0_5 = arith.constant 0 : index
    %6 = memref.load %arg6[%c0_5] : memref<1xf32, #tpu.memory_space<smem>>
    %cst_6 = arith.constant 0.000000e+00 : f32
    %7 = vector.broadcast %cst_6 : f32 to vector<32x256xf32>
    %8 = arith.cmpf oge, %5, %7 : vector<32x256xf32>
    %9 = vector.broadcast %6 : f32 to vector<32x256xf32>
    %10 = arith.mulf %9, %5 : vector<32x256xf32>
    %11 = arith.select %8, %5, %10 : vector<32x256xi1>, vector<32x256xf32>
    %c0_7 = arith.constant 0 : index
    %c0_8 = arith.constant 0 : index
    %12 = vector.load %arg4[%c0_7, %c0_8] : memref<16x32xbf16, #tpu.memory_space<vmem>>, vector<16x32xbf16>
    %13 = arith.truncf %11 : vector<32x256xf32> to vector<32x256xbf16>
    %cst_9 = arith.constant dense<0.000000e+00> : vector<16x256xf32>
    %14 = tpu.matmul %12, %13, %cst_9 {dimension_numbers = #tpu.dot_dimension_numbers<[1], [0], [0], [1], [0, 0, 1, 1], [], []>} : vector<16x32xbf16>, vector<32x256xbf16>, vector<16x256xf32> -> vector<16x256xf32>
    %c0_10 = arith.constant 0 : index
    %c0_11 = arith.constant 0 : index
    %15 = vector.load %arg5[%c0_10, %c0_11] : memref<16x1xf32, #tpu.memory_space<vmem>>, vector<16x1xf32>
    %16 = vector.broadcast %15 : vector<16x1xf32> to vector<16x256xf32>
    %17 = arith.addf %14, %16 : vector<16x256xf32>
    %18 = arith.mulf %17, %17 : vector<16x256xf32>
    %cst_12 = arith.constant dense<0.000000e+00> : vector<256xf32>
    %19 = vector.multi_reduction <add>, %18, %cst_12 [0] : vector<16x256xf32> to vector<256xf32>
    %20 = vector.shape_cast %19 : vector<256xf32> to vector<1x256xf32>
    %cst_13 = arith.constant 1.000000e-24 : f32
    %21 = vector.broadcast %cst_13 : f32 to vector<1x256xf32>
    %22 = arith.maximumf %20, %21 : vector<1x256xf32>
    %23 = math.rsqrt %22 : vector<1x256xf32>
    %24 = vector.broadcast %23 : vector<1x256xf32> to vector<16x256xf32>
    %25 = arith.mulf %17, %24 : vector<16x256xf32>
    %26 = arith.truncf %25 : vector<16x256xf32> to vector<16x256xbf16>
    %c0_14 = arith.constant 0 : index
    %c0_15 = arith.constant 0 : index
    %27 = vector.load %arg7[%c0_14, %c0_15] : memref<16x256xbf16, #tpu.memory_space<vmem>>, vector<16x256xbf16>
    tpu.vector_store %arg7[%c0_14, %c0_15], %26 {strides = array<i32>} : memref<16x256xbf16, #tpu.memory_space<vmem>>, vector<16x256xbf16>,
    return
  }
  func.func @transform_0(%arg0: i32) -> (i32, i32) {
    %c0_i32 = arith.constant 0 : i32
    %c0_i32_0 = arith.constant 0 : i32
    return %c0_i32, %arg0 : i32, i32
  }
  func.func @transform_1(%arg0: i32) -> (i32, i32) {
    %c0_i32 = arith.constant 0 : i32
    %c0_i32_0 = arith.constant 0 : i32
    %c0_i32_1 = arith.constant 0 : i32
    return %c0_i32, %c0_i32_0 : i32, i32
  }
  func.func @transform_2(%arg0: i32) -> (i32, i32) {
    %c0_i32 = arith.constant 0 : i32
    %c0_i32_0 = arith.constant 0 : i32
    %c0_i32_1 = arith.constant 0 : i32
    return %c0_i32, %c0_i32_0 : i32, i32
  }
  func.func @transform_3(%arg0: i32) -> (i32, i32) {
    %c0_i32 = arith.constant 0 : i32
    %c0_i32_0 = arith.constant 0 : i32
    %c0_i32_1 = arith.constant 0 : i32
    return %c0_i32, %c0_i32_0 : i32, i32
  }
  func.func @transform_4(%arg0: i32) -> (i32, i32) {
    %c0_i32 = arith.constant 0 : i32
    %c0_i32_0 = arith.constant 0 : i32
    %c0_i32_1 = arith.constant 0 : i32
    return %c0_i32, %c0_i32_0 : i32, i32
  }
  func.func @transform_5(%arg0: i32) -> i32 {
    %c0_i32 = arith.constant 0 : i32
    %c0_i32_0 = arith.constant 0 : i32
    return %c0_i32 : i32
  }
  func.func @transform_6(%arg0: i32) -> (i32, i32) {
    %c0_i32 = arith.constant 0 : i32
    %c0_i32_0 = arith.constant 0 : i32
    return %c0_i32, %arg0 : i32, i32
  }
}

</mosaic_0001>

<bundles_post_ra>
// kernel: tpu_custom_call.1
= control target key start
LH: loop header
LB: loop body
LE: loop exit
PB: predicated region body
PF: predicated region fallthrough
CT: control target
= control target key end

     0   :  { %s954_s0 = inlined_call_operand.vmem [shape: bf16[16,512], index: 0, kind: input, shape index: {}]   ;;  %s955_s1 = inlined_call_operand.vmem [shape: bf16[32,16], index: 1, kind: input, shape index: {}]   ;;  %s956_s2 = inlined_call_operand.vmem [shape: f32[32,1], index: 2, kind: input, shape index: {}]   ;;  %s957_s3 = inlined_call_operand.vmem [shape: bf16[16,32], index: 3, kind: input, shape index: {}]   ;;  %s958_s4 = inlined_call_operand.vmem [shape: f32[16,1], index: 4, kind: input, shape index: {}]   ;;  %s959_s5 = inlined_call_operand.<no memory space> [shape: f32[1], index: 5, kind: input, shape index: {}]   ;;  %s960_s6 = inlined_call_operand.hbm [shape: bf16[16,512], index: 6, kind: output, shape index: {}]  }
   0x1   :  { %11 = sst [smem:[#allocation2]] %s959_s5 }
   0x2   :  { %12 = vsyncpa [#allocation5], 0 }
   0x3   :  { %14 = vsyncpa [#allocation5 + $0x1], 0  ;;  %s811_s23 = smov 0   ;;  %s813_s24 = smov 0  }
   0x4   :  { %s815_s25 = smov 0   ;;  %s817_s26 = smov 0  }
   0x5 LB: > { %s620_s5 = sadd.s32 4294967295, %s766_s26   ;;  %s621_s27 = sadd.s32 4294967294, %s766_s26   ;;  %s766_s26 = sphi %s817_s26, %s966_s26   ;;  %s762_s25 = sphi %s815_s25, %s965_s25   ;;  %s758_s24 = sphi %s813_s24, %s964_s24   ;;  %s754_s23 = sphi %s811_s23, %s963_s23  }
   0x6   : > { %s834_s28 = sadd.s32 1, %s766_s26   ;;  %s27_s29 = sadd.s32 1, %s762_s25 }
   0x7   : > { %s24_s30 = ssub.s32 %s766_s26, %s834_s28  ;;  %p34_p0 = scmp.ne.s32.totalorder %s762_s25, %s758_s24 }
   0x8   : > { %p25_p1 = scmp.eq.s32.totalorder %s24_s30, 0  ;;  %p35_p2 = scmp.eq.s32.totalorder %s766_s26, 0 }
   0x9   : > { %p169_p3 = scmp.eq.s32.totalorder %s620_s5, 1  ;;  %p174_p4 = scmp.ne.s32.totalorder %s758_s24, %s754_s23 }
   0xa   : > { %s847_s7 = scalar_select %p25_p1, %s762_s25, %s27_s29  }
   0xb   : > { %p36_p5 = por %p35_p2, %p34_p0  ;;  %p849_p6 = por %p169_p3, %p34_p0 }
   0xc   : > { %p175_p7 = scmp.eq.s32.totalorder %s621_s27, 1  ;;  %p623_p9 = scmp.ge.s32.totalorder %s766_s26, 2 }
   0xe   : > { %p853_p8 = por %p175_p7, %p174_p4  ;;  %206 = sbr.rel (%p623_p9) target bundleno = 28 (0x1c), region = 36 }
  0x15   : > { %209 = sbr.rel (!%p36_p5) target bundleno = 28 (0x1c), region = 40  ;;  %s211_s10 = sand.u32 (%p36_p5), 1, %s762_s25  }
  0x16   : > { %s645_s11 = sshll.u32 (%p36_p5), %s766_s26, 3  ;;  %s624_s12 = sshll.u32 (%p36_p5), %s211_s10, 4 }
  0x17   : > { %s216_s15 = scalar_lea.vmem (%p36_p5), %s954_s0, %s645_s11  ;;  %s213_s16 = scalar_lea.vmem (%p36_p5), [#allocation3], %s624_s12 }
  0x18   : > { %v246_v0 = vld [vmem:[%s216_s15] sm:$0xff] (%p36_p5)  ;;  %v248_v1 = vld [vmem:[%s216_s15 + $0x10] sm:$0xff] (%p36_p5) }
  0x19   : > { %247 = vst [vmem:[%s213_s16] sm:$0xff] (%p36_p5), %v246_v0  ;;  %249 = vst [vmem:[%s213_s16 + $0x8] sm:$0xff] (%p36_p5), %v248_v1 }
  0x1c PF: > { %p627_p10 = scmp.ge.s32.totalorder %s766_s26, 1  ;;  %p254_p11 = scmp.lt.s32.totalorder %s766_s26, 3 }
  0x1e   : > { %p255_p12 = pnand %p627_p10, %p254_p11 }
  0x1f   : > { %s261_s17 = sand.u32 (!%p255_p12), 1, %s758_s24   ;;  %v768_v2 = vmov (!%p255_p12), 0   ;;  %v299_v3 = vld [vmem:[%s956_s2] sm:$0xff] (!%p255_p12)  ;;  %v301_v6 = vld [vmem:[%s956_s2 + $0x10] sm:$0xff] (!%p255_p12)  ;;  %v300_v7 = vld [vmem:[%s956_s2 + $0x8] sm:$0xff] (!%p255_p12)  ;;  %vm343_vm0 = vcmask (!%p255_p12), 130048  }
  0x20   : > { %258 = sbr.rel (%p255_p12) target bundleno = 539 (0x21b), region = 78  ;;  %s870_s18 = sshll.u32 (!%p255_p12), %s261_s17, 4  ;;  %382 = vmatprep.mubr.bf16.mxu0 (!%p255_p12), %v768_v2  ;;  %692 = vset.pattern.permute.xlu0 (!%p255_p12), %v768_v2  ;;  %v697_v8 = vld [vmem:[%s955_s1] sm:$0xff] (!%p255_p12)   ;;  %v302_v9 = vld [vmem:[%s956_s2 + $0x18] sm:$0xff] (!%p255_p12)  ;;  %v436_v11 = vld [vmem:[%s958_s4 + $0x8] sm:$0xff] (!%p255_p12)  ;;  %vm452_vm9 = vcmask (!%p255_p12), 261120  }
  0x21   : > { %693 = vset.pattern.permute.xlu1 (!%p255_p12), %v768_v2  ;;  %488 = vmatprep.mubr.bf16.mxu1 (!%p255_p12), %v768_v2  ;;  %s263_s21 = scalar_lea.vmem (!%p255_p12), [#allocation3], %s870_s18  ;;  %v435_v10 = vld [vmem:[%s958_s4] sm:$0xff] (!%p255_p12)  ;;  %v698_v12 = vld [vmem:[%s955_s1 + $0x8] sm:$0xff] (!%p255_p12)   ;;  %s403_s22 = sld [smem:[#allocation2]] (!%p255_p12) }
  0x22   : > { %v694_v4 = vld [vmem:[%s263_s21 + $0x4] ss:$8 sps:$4 sm:$0xff] (!%p255_p12)   ;;  %305 = vperm.xlu0 (!%p255_p12), %692, %v299_v3   ;;  %v696_v5 = vld [vmem:[%s263_s21] ss:$8 sps:$4 sm:$0xff] (!%p255_p12)   ;;  %315 = vperm.xlu1 (!%p255_p12), %693, %v301_v6   ;;  %s289_s30 = scalar_lea.vmem (!%p255_p12), [#allocation4], %s870_s18  ;;  %s648_s11 = sshll.u32 (!%p255_p12), %s620_s5, 7 }
  0x23   : > { %350 = vmatprep.subr.bf16.mxu0 (!%p255_p12), %v694_v4  ;;  %v699_v54 = vld [vmem:[%s957_s3] sm:$0xff] (!%p255_p12)   ;;  %s553_s10 = sshll.u32 (!%p255_p12), %s289_s30, 4  ;;  %s908_s14 = scalar_lea.hbm (!%p255_p12), %s960_s6, %s648_s11  ;;  %s903_s10 = int_to_ptr.vmem [resolvable:$true] %s553_s10 }
  0x24   : > { %351 = vmatpush1.bf16.msra.mxu0 (!%p255_p12), %v696_v5  ;;  %s912_s5 = scalar_lea.sflag (!%p255_p12), [#allocation5], %s261_s17  ;;  %s704_s18 = scalar_lea.vmem (!%p255_p12), %s903_s10, 256 }
  0x25   : > { %p705_p13 = scmp.ne.s32.totalorder (!%p255_p12), %s903_s10, %s704_s18  ;;  %s769_s15 = smov (!%p255_p12), [#allocation4]  }
  0x26   : > { %310 = vperm.xlu0 (!%p255_p12), %692, %v300_v7   ;;  %320 = vperm.xlu1 (!%p255_p12), %693, %v302_v9   ;;  %s708_s16 = sshll.u32 (!%p255_p12), %s769_s15, 4  ;;  %s709_s16 = int_to_ptr.vmem [resolvable:$false] %s708_s16 }
  0x27   : > { %634 = vmatmul.mubr.msk.bf16.vlgmr.msra.gmra.mrb[0].mxu0 %vm343_vm0, %v697_v8  ;;  %v412_v15 = vstv %s403_s22  ;;  %p706_p0 = pnand %p705_p13, %p849_p6  ;;  %s710_s19 = scalar_lea.vmem %s709_s16, 512 }
  0x28   : > { %392 = vmatprep.mubr.bf16.mxu0 %v768_v2  ;;  %p711_p2 = scmp.lt.s32.totalorder %s903_s10, %s709_s16  ;;  %p712_p3 = scmp.lt.s32.totalorder %s710_s19, %s704_s18 }
  0x29   : > { %p707_p1 = pneg %p706_p0 }
  0x2a   : > { %439 = vperm.xlu0 %692, %v435_v10   ;;  %444 = vperm.xlu1 %693, %v436_v11   ;;  %p713_p4 = por %p712_p3, %p711_p2 }
  0x2c   : > { %p714_p5 = pnand %p713_p4, %p707_p1 }
  0x2f   : > { %635 = vmatmul.mubr.msk.bf16.gmra.mrb[4].mxu0 %vm343_vm0, %v698_v12 }
  0xa1   : > { %v306_v13 = vpop.permute.xlu0 %305  ;;  %v316_v24 = vpop.permute.xlu1 %315 }
  0xa5   : > { %v311_v18 = vpop.permute.xlu0 %310  ;;  %v321_v38 = vpop.permute.xlu1 %320 }
  0xa9   : > { %v440_v55 = vpop.permute.xlu0 %439  ;;  %v445_v59 = vpop.permute.xlu1 %444 }
  0xfa   : > { %v384_v14 = vpop.f32.mrb[0].mxu0 }
  0xfb   : > { %v385_v16 = vadd.f32 %v384_v14, %v306_v13  ;;  %v386_v17 = vpop.f32.mrb[1].mxu0 }
  0xfc   : > { %v387_v19 = vadd.f32 %v386_v17, %v306_v13  ;;  %v388_v20 = vpop.f32.mrb[2].mxu0 }
  0xfd   : > { %v413_v21 = vmul.f32 %v412_v15, %v385_v16  ;;  %v389_v22 = vadd.f32 %v388_v20, %v311_v18  ;;  %v390_v23 = vpop.f32.mrb[3].mxu0  ;;  %vm404_vm1 = vcmp.ge.f32.partialorder %v385_v16, 0.0 }
  0xfe   : > { %v414_v25 = vmul.f32 %v412_v15, %v387_v19  ;;  %v391_v26 = vadd.f32 %v390_v23, %v311_v18  ;;  %vm405_vm2 = vcmp.ge.f32.partialorder %v387_v19, 0.0 }
  0xff   : > { %v415_v27 = vmul.f32 %v412_v15, %v389_v22  ;;  %vm406_vm3 = vcmp.ge.f32.partialorder %v389_v22, 0.0  ;;  %v421_v29 = vsel %vm404_vm1, %v385_v16, %v413_v21 }
 0x100   : > { %v416_v28 = vmul.f32 %v412_v15, %v391_v26  ;;  %vm407_vm4 = vcmp.ge.f32.partialorder %v391_v26, 0.0  ;;  %v422_v32 = vsel %vm405_vm2, %v387_v19, %v414_v25 }
 0x101   : > { %v423_v30 = vsel %vm406_vm3, %v389_v22, %v415_v27 }
 0x102   : > { %v394_v31 = vpop.f32.mrb[4].mxu0  ;;  %v424_v33 = vsel %vm407_vm4, %v391_v26, %v416_v28  ;;  %v431_v34 = vpack.c.bf16 %v423_v30, %v421_v29 }
 0x103   : > { %v395_v35 = vadd.f32 %v394_v31, %v316_v24  ;;  %v396_v36 = vpop.f32.mrb[5].mxu0  ;;  %v432_v37 = vpack.c.bf16 %v424_v33, %v422_v32 }
 0x104   : > { %v397_v39 = vadd.f32 %v396_v36, %v316_v24  ;;  %v398_v40 = vpop.f32.mrb[6].mxu0 }
 0x105   : > { %v417_v41 = vmul.f32 %v412_v15, %v395_v35  ;;  %v399_v42 = vadd.f32 %v398_v40, %v321_v38  ;;  %v400_v43 = vpop.f32.mrb[7].mxu0  ;;  %456 = vmatprep.subr.bf16.mxu1 %v432_v37  ;;  %vm408_vm5 = vcmp.ge.f32.partialorder %v395_v35, 0.0 }
 0x106   : > { %v418_v44 = vmul.f32 %v412_v15, %v397_v39  ;;  %v401_v45 = vadd.f32 %v400_v43, %v321_v38  ;;  %457 = vmatpush1.bf16.msra.mxu1 %v431_v34  ;;  %vm409_vm6 = vcmp.ge.f32.partialorder %v397_v39, 0.0 }
 0x107   : > { %vm410_vm7 = vcmp.ge.f32.partialorder %v399_v42, 0.0  ;;  %v419_v46 = vmul.f32 %v412_v15, %v399_v42  ;;  %v425_v48 = vsel %vm408_vm5, %v395_v35, %v417_v41 }
 0x108   : > { %vm411_vm8 = vcmp.ge.f32.partialorder %v401_v45, 0.0  ;;  %v420_v47 = vmul.f32 %v412_v15, %v401_v45  ;;  %v426_v50 = vsel %vm409_vm6, %v397_v39, %v418_v44 }
 0x109   : > { %v427_v49 = vsel %vm410_vm7, %v399_v42, %v419_v46 }
 0x10a   : > { %v428_v51 = vsel %vm411_vm8, %v401_v45, %v420_v47  ;;  %v433_v52 = vpack.c.bf16 %v427_v49, %v425_v48 }
 0x10b   : > { %v434_v53 = vpack.c.bf16 %v428_v51, %v426_v50 }
 0x10d   : > { %458 = vmatprep.subr.bf16.mxu1 %v434_v53 }
 0x10e   : > { %459 = vmatpush1.bf16.msra.mxu1 %v433_v52 }
 0x111   : > { %637 = vmatmul.mubr.msk.bf16.vlgmr.msra.gmra.mrb[0].mxu1 %vm452_vm9, %v699_v54 }
 0x1e4   : > { %v490_v56 = vpop.f32.mrb[0].mxu1 }
 0x1e5   : > { %v491_v57 = vadd.f32 %v490_v56, %v440_v55  ;;  %v492_v58 = vpop.f32.mrb[1].mxu1 }
 0x1e6   : > { %v493_v60 = vadd.f32 %v492_v58, %v440_v55  ;;  %v494_v61 = vpop.f32.mrb[2].mxu1 }
 0x1e7   : > { %v495_v62 = vadd.f32 %v494_v61, %v445_v59  ;;  %v496_v63 = vpop.f32.mrb[3].mxu1  ;;  %v499_v1 = vmul.f32 %v491_v57, %v491_v57 }
 0x1e8   : > { %v497_v0 = vadd.f32 %v496_v63, %v445_v59  ;;  %v500_v3 = vmul.f32 %v493_v60, %v493_v60 }
 0x1e9   : > { %v501_v2 = vmul.f32 %v495_v62, %v495_v62 }
 0x1ea   : > { %v502_v4 = vmul.f32 %v497_v0, %v497_v0 }
 0x1eb   : > { %v503_v5 = vadd.f32 %v501_v2, %v499_v1 }
 0x1ec   : > { %v510_v6 = vadd.f32 %v502_v4, %v500_v3 }
 0x1ed   : > { %v504_v7 = vrot.slane %v503_v5, 4 }
 0x1ee   : > { %v511_v8 = vrot.slane %v510_v6, 4 }
 0x1ef   : > { %v505_v9 = vadd.f32 %v504_v7, %v503_v5 }
 0x1f0   : > { %v512_v10 = vadd.f32 %v511_v8, %v510_v6 }
 0x1f1   : > { %v506_v11 = vrot.slane %v505_v9, 2 }
 0x1f2   : > { %v513_v12 = vrot.slane %v512_v10, 2 }
 0x1f3   : > { %v507_v13 = vadd.f32 %v506_v11, %v505_v9 }
 0x1f4   : > { %v514_v14 = vadd.f32 %v513_v12, %v512_v10 }
 0x1f5   : > { %v508_v15 = vrot.slane %v507_v13, 1 }
 0x1f6   : > { %v515_v16 = vrot.slane %v514_v14, 1 }
 0x1f7   : > { %v509_v17 = vadd.f32 %v508_v15, %v507_v13 }
 0x1f8   : > { %v516_v18 = vadd.f32 %v515_v16, %v514_v14 }
 0x1f9   : > { %v517_v19 = vmax.f32 %v509_v17, 1e-24 }
 0x1fa   : > { %v518_v20 = vmax.f32 %v516_v18, 1e-24 }
 0x1fb   : > { %700 = vrsqrt.f32 %v517_v19 }
 0x1fc   : > { %702 = vrsqrt.f32 %v518_v20 }
 0x205   : > { %v701_v21 = vpop.eup %700 }
 0x206   : > { %v703_v22 = vpop.eup %702  ;;  %v523_v23 = vmul.f32 %v701_v21, %v495_v62  ;;  %v521_v24 = vmul.f32 %v701_v21, %v491_v57 }
 0x207   : > { %v524_v25 = vmul.f32 %v703_v22, %v497_v0  ;;  %v522_v26 = vmul.f32 %v703_v22, %v493_v60 }
 0x209   : > { %v647_v27 = vpack.c.bf16 %v524_v25, %v523_v23  ;;  %v646_v28 = vpack.c.bf16 %v522_v26, %v521_v24 }
 0x20b   : > { %538 = vst [vmem:[%s289_s30 + $0x8] sm:$0xff] %v647_v27  ;;  %537 = vst [vmem:[%s289_s30] sm:$0xff] %v646_v28 }
 0x20c   : > { %717 = shalt.err (!%p714_p5)
}
 0x20d   : > { %s718_s17 = scalar_lea.hbm %s908_s14, 256  ;;  %s722_s22 = scalar_lea.hbm %s960_s6, 512 }
 0x20e   : > { %p719_p7 = scmp.ne.s32.totalorder %s908_s14, %s718_s17  ;;  %p723_p12 = scmp.lt.u32.totalorder %s908_s14, %s960_s6 }
 0x20f   : > { %p724_p13 = scmp.lt.u32.totalorder %s722_s22, %s718_s17  ;;  %p726_p1 = scmp.lt.u32.totalorder %s718_s17, %s908_s14 }
 0x210   : > { %p720_p10 = pnand %p719_p7, %p849_p6 }
 0x211   : > { %p725_p0 = por %p724_p13, %p723_p12 }
 0x212   : > { %p721_p11 = pneg %p720_p10 }
 0x213   : > { %p727_p2 = por %p726_p1, %p725_p0 }
 0x215   : > { %p728_p3 = pnand %p727_p2, %p721_p11 }
 0x217   : > { %731 = shalt.err (!%p728_p3)
}
 0x218   : > { %s770_s30 = smov 128   ;;  %s771_s11 = smov 256  }
 0x219   : > { %s772_s12 = smov 8  }
 0x21a   : > { %649 = dma.vmem_to_hbm [thread:$0]  (%p849_p6), %s903_s10, 256, %s908_s14, %s912_s5, %s770_s30, %s771_s11, %s772_s12  }
 0x21b PF: > { %s568_s13 = sand.u32 1, %s754_s23   ;;  %p652_p4 = pnand %p623_p9, %p853_p8 }
 0x21c   : > { %s569_s18 = scalar_lea.sflag [#allocation5], %s568_s13 }
 0x21d   : > { %749 = dma.done.wait (!%p652_p4), %s569_s18, 256  }
 0x21e   : > { %751 = vsyncadd (!%p652_p4), %s569_s18, 4294967040  ;;  %p17_p5 = scmp.ge.s32.totalorder %s834_s28, 4   ;;  %s963_s23 = smov %s758_s24 }
 0x21f   : > { %s964_s24 = smov %s762_s25  ;;  %s965_s25 = smov %s847_s7 }
 0x220   : > { %s966_s26 = smov %s834_s28  ;;  %19 = sbr.rel (!%p17_p5) target bundleno = 5 (0x5), region = 122 }
 0x227   :  { %574 = vsyncpa [#allocation5], 1 }
 0x228   :  { %576 = vsyncpa [#allocation5 + $0x1], 1 }

</bundles_post_ra>
